<compile_context>
chip_gen: v7x
topology: tpu7x:2x2x1
jax: 0.10.0
libtpu: 0.0.40
codegen_flags: <defaults>
</compile_context>

<pallas_src>
import functools

import jax
import jax.numpy as jnp
from jax.experimental import pallas as pl
from jax.experimental.pallas import tpu as pltpu


def _round_up(x: int, m: int) -> int:
    return ((x + m - 1) // m) * m


def _cdiv(a: int, b: int) -> int:
    return (a + b - 1) // b


def _mlp_kernel(*refs, n_layers: int):
    """Fused MLP on one batch tile.

    refs = (x_ref, w0_ref, b0_ref, ..., w{L-1}_ref, b{L-1}_ref, o_ref)
      x_ref : (TB, d_in) f32       activation tile (feature dim unpadded)
      wi    : (k_i, out_pad_i) bf16  pre-transposed, zero-padded weights
      bi    : (1, out_pad_i) f32     zero-padded bias
      o_ref : (TB, out_pad_last) f32
    """
    x_ref = refs[0]
    o_ref = refs[-1]
    wb = refs[1:-1]

    h = x_ref[...].astype(jnp.float32)
    for i in range(n_layers):
        w = wb[2 * i][...]        # bf16
        b = wb[2 * i + 1][...]    # f32
        # bf16 MXU inputs, f32 accumulate; bias + ReLU in f32.
        h = jnp.dot(h.astype(jnp.bfloat16), w,
                    preferred_element_type=jnp.float32) + b
        if i != n_layers - 1:
            h = jnp.maximum(h, 0.0)  # ReLU on hidden layers only
    o_ref[...] = h.astype(o_ref.dtype)


@functools.partial(jax.jit, static_argnames=("output_dim",))
def _mlp_forward(x, params, *, output_dim: int):
    """x: (B, input_dim) f32; params: tuple of (w_pad bf16 (k,out_pad), b_pad f32 (1,out_pad))."""
    B, d_in = x.shape
    n_layers = len(params)
    out_pad_last = params[-1][0].shape[1]

    # --- Batch tiling --------------------------------------------------------
    TB = min(512, _round_up(B, 8))
    if B >= 16:
        # Guarantee >= 2 grid steps so the "parallel" axis shards across both
        # TensorCores on v7x (single-step grids leave one TC idle).
        TB = min(TB, _round_up(_cdiv(B, 2), 8))
    B_pad = _round_up(B, TB)

    # Pad batch rows only (feature dim stays unpadded in HBM); skip the copy
    # entirely when the batch already divides the tile.
    x_in = x if B_pad == B else jnp.pad(x, ((0, B_pad - B), (0, 0)))

    # --- BlockSpecs -----------------------------------------------------------
    flat_params = []
    in_specs = [pl.BlockSpec((TB, d_in), lambda i: (i, 0))]
    for w, b in params:
        flat_params.extend([w, b])
        # Constant block index -> fetched once, VMEM-resident for all grid steps.
        # Buffered(1): no double-buffering of resident weights (halves their VMEM).
        in_specs.append(pl.BlockSpec(w.shape, lambda i: (0, 0),
                                     pipeline_mode=pl.Buffered(1)))
        in_specs.append(pl.BlockSpec(b.shape, lambda i: (0, 0),
                                     pipeline_mode=pl.Buffered(1)))

    # --- Explicit VMEM budget (keep under v7x's 64 MiB/TC) --------------------
    wb_bytes = sum(int(w.size) * w.dtype.itemsize + int(b.size) * b.dtype.itemsize
                   for w, b in params)                      # single-buffered
    widest = max(w.shape[1] for w, _ in params)
    act_bytes = 2 * TB * d_in * 4 + 2 * TB * out_pad_last * 4   # dbl-buffered I/O tiles
    interm_bytes = 2 * TB * widest * 4                           # in-flight activations
    vmem_limit = int(min(48 * 1024 * 1024,
                         max(32 * 1024 * 1024,
                             2 * (wb_bytes + act_bytes + interm_bytes))))

    # --- Cost hint so XLA schedules the wrapper pad/slice around the call -----
    flops = 2 * B_pad * sum(w.shape[0] * w.shape[1] for w, _ in params)
    bytes_accessed = (int(x_in.size) * x_in.dtype.itemsize
                      + wb_bytes
                      + B_pad * out_pad_last * 4)
    cost = pl.CostEstimate(flops=flops, transcendentals=0,
                           bytes_accessed=bytes_accessed)

    kernel = functools.partial(_mlp_kernel, n_layers=n_layers)

    out_pad = pl.pallas_call(
        kernel,
        out_shape=jax.ShapeDtypeStruct((B_pad, out_pad_last), x.dtype),
        grid=(B_pad // TB,),
        in_specs=in_specs,
        out_specs=pl.BlockSpec((TB, out_pad_last), lambda i: (i, 0)),
        compiler_params=pltpu.CompilerParams(
            dimension_semantics=("parallel",),   # batch tiles are independent
            vmem_limit_bytes=vmem_limit,
        ),
        cost_estimate=cost,
    )(x_in, *flat_params)

    return out_pad[:B, :output_dim]


class PallasMLP:
    """JAX/Pallas equivalent of the PyTorch MLP module (inference forward)."""

    def __init__(self, input_dim, hidden_dims, output_dim=1, key=None,
                 dtype=jnp.float32):
        if key is None:
            key = jax.random.PRNGKey(0)
        self.output_dim = int(output_dim)

        dims = list(hidden_dims) + [output_dim]
        self.params_ref = []     # PyTorch layout (out, in) / (out,) — reference math
        padded = []              # kernel layout: (k, out_pad) bf16 / (1, out_pad) f32
        prev = input_dim
        for li, d in enumerate(dims):
            key, kw, kb = jax.random.split(key, 3)
            bound = 1.0 / float(prev) ** 0.5
            # PyTorch nn.Linear init: U(-1/sqrt(fan_in), 1/sqrt(fan_in)); weight (out, in).
            w = jax.random.uniform(kw, (d, prev), dtype, -bound, bound)
            b = jax.random.uniform(kb, (d,), dtype, -bound, bound)
            self.params_ref.append((w, b))

            # Hoisted glue (once at init): transpose to (in, out), zero-pad output
            # feature dims to 128-multiples, cast weights to bf16 for the MXU.
            # Layer-0 K dim stays at input_dim (no HBM padding of x's feature dim).
            k_dim = prev if li == 0 else _round_up(prev, 128)
            out_pad = _round_up(d, 128)
            w_pad = (jnp.zeros((k_dim, out_pad), jnp.float32)
                     .at[:prev, :d].set(w.T.astype(jnp.float32))
                     .astype(jnp.bfloat16))
            b_pad = jnp.zeros((1, out_pad), jnp.float32).at[0, :d].set(
                b.astype(jnp.float32))
            padded.append((w_pad, b_pad))
            prev = d

        self.padded_params = tuple(padded)
        self.n_layers = len(self.padded_params)

    def __call__(self, x):
        return _mlp_forward(x, self.padded_params, output_dim=self.output_dim)


def _reference_forward(model: PallasMLP, x, matmul_dtype=jnp.float32):
    """Pure-JAX reference. matmul_dtype=bf16 mirrors the kernel's MXU math."""
    h = x.astype(jnp.float32)
    for i, (w, b) in enumerate(model.params_ref):
        h = jnp.dot(h.astype(matmul_dtype), w.T.astype(matmul_dtype),
                    preferred_element_type=jnp.float32) + b.astype(jnp.float32)
        if i != model.n_layers - 1:
            h = jnp.maximum(h, 0.0)
    return h


if __name__ == "__main__":
    # Small shapes consistent with the module's forward: x is (batch, input_dim).
    batch, input_dim = 2, 16
    hidden_dims = [32, 32]
    output_dim = 1

    key = jax.random.PRNGKey(0)
    k_x, k_x2, k_params = jax.random.split(key, 3)
    x = jax.random.normal(k_x, (batch, input_dim), jnp.float32)

    model = PallasMLP(input_dim, hidden_dims, output_dim, key=k_params)

    # Small-batch path (single grid step).
    y = model(x)
    jax.block_until_ready(y)
    assert y.shape == (batch, output_dim), y.shape
    # Tight-ish check vs a reference with the same bf16-input / f32-accumulate math.
    ref_bf16 = _reference_forward(model, x, matmul_dtype=jnp.bfloat16)
    assert jnp.allclose(y, ref_bf16, atol=1e-2, rtol=1e-2), float(jnp.max(jnp.abs(y - ref_bf16)))
    # Loose check vs the full-f32 reference (bf16 MXU-input approximation).
    ref_f32 = _reference_forward(model, x, matmul_dtype=jnp.float32)
    assert jnp.allclose(y, ref_f32, atol=1e-1, rtol=1e-1), float(jnp.max(jnp.abs(y - ref_f32)))

    # Larger-batch path exercises the batch grid (>=2 tiles + batch padding).
    x2 = jax.random.normal(k_x2, (300, input_dim), jnp.float32)
    y2 = model(x2)
    jax.block_until_ready(y2)
    assert y2.shape == (300, output_dim), y2.shape
    ref2_bf16 = _reference_forward(model, x2, matmul_dtype=jnp.bfloat16)
    assert jnp.allclose(y2, ref2_bf16, atol=1e-2, rtol=1e-2), float(jnp.max(jnp.abs(y2 - ref2_bf16)))
    ref2_f32 = _reference_forward(model, x2, matmul_dtype=jnp.float32)
    assert jnp.allclose(y2, ref2_f32, atol=1e-1, rtol=1e-1), float(jnp.max(jnp.abs(y2 - ref2_f32)))

    print("KERNEL_OK")
</pallas_src>

<mosaic_0001>
module attributes {stable_mosaic.version = 11 : i64} {
  func.func @_mlp_kernel(%arg0: i32, %arg1: memref<8x16xf32, #tpu.memory_space<vmem>>, %arg2: memref<16x128xbf16, #tpu.memory_space<vmem>>, %arg3: memref<1x128xf32, #tpu.memory_space<vmem>>, %arg4: memref<128x128xbf16, #tpu.memory_space<vmem>>, %arg5: memref<1x128xf32, #tpu.memory_space<vmem>>, %arg6: memref<128x128xbf16, #tpu.memory_space<vmem>>, %arg7: memref<1x128xf32, #tpu.memory_space<vmem>>, %arg8: memref<8x128xf32, #tpu.memory_space<vmem>>) attributes {dimension_semantics = [#tpu.dimension_semantics<parallel>], iteration_bounds = array<i64: 1>, scalar_prefetch = 0 : i64, scratch_operands = 0 : i64, tpu.core_type = #tpu.core_type<tc>, window_params = [{transform_indices = @transform_0, window_bounds = array<i64: 8, 16>}, {pipeline_mode = #tpu.pipeline_mode<synchronous>, transform_indices = @transform_1, window_bounds = array<i64: 16, 128>}, {pipeline_mode = #tpu.pipeline_mode<synchronous>, transform_indices = @transform_2, window_bounds = array<i64: 1, 128>}, {pipeline_mode = #tpu.pipeline_mode<synchronous>, transform_indices = @transform_3, window_bounds = array<i64: 128, 128>}, {pipeline_mode = #tpu.pipeline_mode<synchronous>, transform_indices = @transform_4, window_bounds = array<i64: 1, 128>}, {pipeline_mode = #tpu.pipeline_mode<synchronous>, transform_indices = @transform_5, window_bounds = array<i64: 128, 128>}, {pipeline_mode = #tpu.pipeline_mode<synchronous>, transform_indices = @transform_6, window_bounds = array<i64: 1, 128>}, {transform_indices = @transform_7, window_bounds = array<i64: 8, 128>}]} {
    %c0 = arith.constant 0 : index
    %c0_0 = arith.constant 0 : index
    %0 = vector.load %arg1[%c0, %c0_0] : memref<8x16xf32, #tpu.memory_space<vmem>>, vector<8x16xf32>
    %c0_1 = arith.constant 0 : index
    %c0_2 = arith.constant 0 : index
    %1 = vector.load %arg2[%c0_1, %c0_2] : memref<16x128xbf16, #tpu.memory_space<vmem>>, vector<16x128xbf16>
    %c0_3 = arith.constant 0 : index
    %c0_4 = arith.constant 0 : index
    %2 = vector.load %arg3[%c0_3, %c0_4] : memref<1x128xf32, #tpu.memory_space<vmem>>, vector<1x128xf32>
    %3 = arith.truncf %0 : vector<8x16xf32> to vector<8x16xbf16>
    %cst = arith.constant dense<0.000000e+00> : vector<8x128xf32>
    %4 = tpu.matmul %3, %1, %cst {dimension_numbers = #tpu.dot_dimension_numbers<[1], [0], [0], [1], [0, 0, 1, 1], [], []>} : vector<8x16xbf16>, vector<16x128xbf16>, vector<8x128xf32> -> vector<8x128xf32>
    %5 = vector.broadcast %2 : vector<1x128xf32> to vector<8x128xf32>
    %6 = arith.addf %4, %5 : vector<8x128xf32>
    %cst_5 = arith.constant 0.000000e+00 : f32
    %7 = vector.broadcast %cst_5 : f32 to vector<8x128xf32>
    %8 = arith.maximumf %6, %7 : vector<8x128xf32>
    %c0_6 = arith.constant 0 : index
    %c0_7 = arith.constant 0 : index
    %9 = vector.load %arg4[%c0_6, %c0_7] : memref<128x128xbf16, #tpu.memory_space<vmem>>, vector<128x128xbf16>
    %c0_8 = arith.constant 0 : index
    %c0_9 = arith.constant 0 : index
    %10 = vector.load %arg5[%c0_8, %c0_9] : memref<1x128xf32, #tpu.memory_space<vmem>>, vector<1x128xf32>
    %11 = arith.truncf %8 : vector<8x128xf32> to vector<8x128xbf16>
    %cst_10 = arith.constant dense<0.000000e+00> : vector<8x128xf32>
    %12 = tpu.matmul %11, %9, %cst_10 {dimension_numbers = #tpu.dot_dimension_numbers<[1], [0], [0], [1], [0, 0, 1, 1], [], []>} : vector<8x128xbf16>, vector<128x128xbf16>, vector<8x128xf32> -> vector<8x128xf32>
    %13 = vector.broadcast %10 : vector<1x128xf32> to vector<8x128xf32>
    %14 = arith.addf %12, %13 : vector<8x128xf32>
    %cst_11 = arith.constant 0.000000e+00 : f32
    %15 = vector.broadcast %cst_11 : f32 to vector<8x128xf32>
    %16 = arith.maximumf %14, %15 : vector<8x128xf32>
    %c0_12 = arith.constant 0 : index
    %c0_13 = arith.constant 0 : index
    %17 = vector.load %arg6[%c0_12, %c0_13] : memref<128x128xbf16, #tpu.memory_space<vmem>>, vector<128x128xbf16>
    %c0_14 = arith.constant 0 : index
    %c0_15 = arith.constant 0 : index
    %18 = vector.load %arg7[%c0_14, %c0_15] : memref<1x128xf32, #tpu.memory_space<vmem>>, vector<1x128xf32>
    %19 = arith.truncf %16 : vector<8x128xf32> to vector<8x128xbf16>
    %cst_16 = arith.constant dense<0.000000e+00> : vector<8x128xf32>
    %20 = tpu.matmul %19, %17, %cst_16 {dimension_numbers = #tpu.dot_dimension_numbers<[1], [0], [0], [1], [0, 0, 1, 1], [], []>} : vector<8x128xbf16>, vector<128x128xbf16>, vector<8x128xf32> -> vector<8x128xf32>
    %21 = vector.broadcast %18 : vector<1x128xf32> to vector<8x128xf32>
    %22 = arith.addf %20, %21 : vector<8x128xf32>
    %c0_17 = arith.constant 0 : index
    %c0_18 = arith.constant 0 : index
    %23 = vector.load %arg8[%c0_17, %c0_18] : memref<8x128xf32, #tpu.memory_space<vmem>>, vector<8x128xf32>
    tpu.vector_store %arg8[%c0_17, %c0_18], %22 {strides = array<i32>} : memref<8x128xf32, #tpu.memory_space<vmem>>, vector<8x128xf32>,
    return
  }
  func.func @transform_0(%arg0: i32) -> (i32, i32) {
    %c0_i32 = arith.constant 0 : i32
    %c0_i32_0 = arith.constant 0 : i32
    return %arg0, %c0_i32 : i32, i32
  }
  func.func @transform_1(%arg0: i32) -> (i32, i32) {
    %c0_i32 = arith.constant 0 : i32
    %c0_i32_0 = arith.constant 0 : i32
    %c0_i32_1 = arith.constant 0 : i32
    return %c0_i32, %c0_i32_0 : i32, i32
  }
  func.func @transform_2(%arg0: i32) -> (i32, i32) {
    %c0_i32 = arith.constant 0 : i32
    %c0_i32_0 = arith.constant 0 : i32
    %c0_i32_1 = arith.constant 0 : i32
    return %c0_i32, %c0_i32_0 : i32, i32
  }
  func.func @transform_3(%arg0: i32) -> (i32, i32) {
    %c0_i32 = arith.constant 0 : i32
    %c0_i32_0 = arith.constant 0 : i32
    %c0_i32_1 = arith.constant 0 : i32
    return %c0_i32, %c0_i32_0 : i32, i32
  }
  func.func @transform_4(%arg0: i32) -> (i32, i32) {
    %c0_i32 = arith.constant 0 : i32
    %c0_i32_0 = arith.constant 0 : i32
    %c0_i32_1 = arith.constant 0 : i32
    return %c0_i32, %c0_i32_0 : i32, i32
  }
  func.func @transform_5(%arg0: i32) -> (i32, i32) {
    %c0_i32 = arith.constant 0 : i32
    %c0_i32_0 = arith.constant 0 : i32
    %c0_i32_1 = arith.constant 0 : i32
    return %c0_i32, %c0_i32_0 : i32, i32
  }
  func.func @transform_6(%arg0: i32) -> (i32, i32) {
    %c0_i32 = arith.constant 0 : i32
    %c0_i32_0 = arith.constant 0 : i32
    %c0_i32_1 = arith.constant 0 : i32
    return %c0_i32, %c0_i32_0 : i32, i32
  }
  func.func @transform_7(%arg0: i32) -> (i32, i32) {
    %c0_i32 = arith.constant 0 : i32
    %c0_i32_0 = arith.constant 0 : i32
    return %arg0, %c0_i32 : i32, i32
  }
}

</mosaic_0001>

<bundles_post_ra>
// kernel: _mlp_forward.1
= control target key start
LH: loop header
LB: loop body
LE: loop exit
PB: predicated region body
PF: predicated region fallthrough
CT: control target
= control target key end

     0   :  { %12 = vsyncpa [#allocation3], 0  ;;  %s615_s0 = inlined_call_operand.vmem [shape: f32[8,16], index: 0, kind: input, shape index: {}]   ;;  %s616_s1 = inlined_call_operand.vmem [shape: bf16[16,128], index: 1, kind: input, shape index: {}]   ;;  %s617_s2 = inlined_call_operand.vmem [shape: f32[1,128], index: 2, kind: input, shape index: {}]   ;;  %s618_s3 = inlined_call_operand.hbm [shape: bf16[128,128], index: 3, kind: input, shape index: {}]   ;;  %s619_s4 = inlined_call_operand.vmem [shape: f32[1,128], index: 4, kind: input, shape index: {}]   ;;  %s620_s5 = inlined_call_operand.hbm [shape: bf16[128,128], index: 5, kind: input, shape index: {}]   ;;  %s621_s6 = inlined_call_operand.vmem [shape: f32[1,128], index: 6, kind: input, shape index: {}]   ;;  %s622_s7 = inlined_call_operand.vmem [shape: f32[8,128], index: 7, kind: output, shape index: {}]  }
   0x1   :  { %13 = vsyncpa [#allocation5], 0  ;;  %s507_s24 = smov [#allocation2]   ;;  %s459_s28 = scalar_lea.hbm %s618_s3, 1024 }
   0x2   :  { %s25_s25 = sshll.u32 %s507_s24, 4  ;;  %p460_p0 = scmp.ne.s32.totalorder %s618_s3, %s459_s28  ;;  %s26_s25 = int_to_ptr.vmem [resolvable:$true] %s25_s25 }
   0x3   :  { %p463_p1 = scmp.lt.u32.totalorder %s459_s28, %s618_s3 }
   0x5   :  { %p465_p2 = pnand %p463_p1, %p460_p0 }
   0x7   :  { %468 = shalt.err (!%p465_p2)
}
   0x8   :  { %s469_s10 = scalar_lea.vmem %s26_s25, 1024  ;;  %p474_p4 = scmp.lt.s32.totalorder %s26_s25, %s26_s25 }
   0x9   :  { %p470_p3 = scmp.ne.s32.totalorder %s26_s25, %s469_s10  ;;  %p475_p5 = scmp.lt.s32.totalorder %s469_s10, %s469_s10 }
   0xb   :  { %p476_p6 = por %p475_p5, %p474_p4 }
   0xd   :  { %p477_p7 = pnand %p476_p6, %p470_p3 }
   0xf   :  { %480 = shalt.err (!%p477_p7)
}
  0x10   :  { %s508_s11 = smov 64   ;;  %s509_s12 = smov 4  }
  0x11   :  { %31 = dma.hbm_to_vmem [thread:$0]  %s618_s3, 1024, %s26_s25, [#allocation3], %s508_s11, %s508_s11, %s509_s12  }
  0x12   :  { %s510_s15 = smov [#allocation4]   ;;  %s481_s19 = scalar_lea.hbm %s620_s5, 1024 }
  0x13   :  { %s39_s16 = sshll.u32 %s510_s15, 4  ;;  %p482_p8 = scmp.ne.s32.totalorder %s620_s5, %s481_s19  ;;  %s40_s16 = int_to_ptr.vmem [resolvable:$true] %s39_s16 }
  0x14   :  { %p485_p9 = scmp.lt.u32.totalorder %s481_s19, %s620_s5 }
  0x16   :  { %p487_p10 = pnand %p485_p9, %p482_p8 }
  0x18   :  { %490 = shalt.err (!%p487_p10)
}
  0x19   :  { %s491_s24 = scalar_lea.vmem %s40_s16, 1024  ;;  %p496_p12 = scmp.lt.s32.totalorder %s40_s16, %s40_s16 }
  0x1a   :  { %p492_p11 = scmp.ne.s32.totalorder %s40_s16, %s491_s24  ;;  %p497_p13 = scmp.lt.s32.totalorder %s491_s24, %s491_s24 }
  0x1c   :  { %p498_p0 = por %p497_p13, %p496_p12 }
  0x1e   :  { %p499_p1 = pnand %p498_p0, %p492_p11 }
  0x20   :  { %502 = shalt.err (!%p499_p1)
}
  0x21   :  { %45 = dma.hbm_to_vmem [thread:$0]  %s620_s5, 1024, %s40_s16, [#allocation5], %s508_s11, %s508_s11, %s509_s12  }
  0x22   :  { %503 = dma.done.wait [#allocation3], 1024  }
  0x23   :  { %504 = vsyncadd [#allocation3], 4294966272 }
  0x24   :  { %505 = dma.done.wait [#allocation5], 1024  }
  0x25   :  { %506 = vsyncadd [#allocation5], 4294966272  ;;  %v511_v0 = vmov 0.0   ;;  %vm512_vm0 = vmmov 0   ;;  %v442_v1 = vld [vmem:[%s616_s1] sm:$0xff]   ;;  %vm72_vm1 = vcmask 130048  }
  0x26   :  { %390 = vmatprep.subr.bf16.mxu0 %v511_v0  ;;  %392 = vmatprep.mubr.msk.bf16.mxu0 %vm512_vm0, %v511_v0  ;;  %v55_v2 = vld [vmem:[%s615_s0] sm:$0xff]  ;;  %v444_v5 = vld [vmem:[#allocation2 + $0x8] sm:$0xff]   ;;  %v445_v6 = vld [vmem:[#allocation2 + $0x10] sm:$0xff]  }
  0x27   :  { %396 = vmatprep.subr.bf16.mxu1 %v511_v0  ;;  %412 = vmatprep.mubr.msk.bf16.mxu1 %vm512_vm0, %v511_v0  ;;  %v59_v3 = vpack.c.bf16 %v55_v2, %v55_v2  ;;  %v443_v4 = vld [vmem:[#allocation2] sm:$0xff]   ;;  %v446_v7 = vld [vmem:[#allocation2 + $0x18] sm:$0xff]   ;;  %v448_v9 = vld [vmem:[#allocation2 + $0x28] sm:$0xff]  }
  0x28   :  { %391 = vmatpush3.bf16.msra.mxu0 %v442_v1  ;;  %397 = vmatpush3.bf16.msra.mxu1 %v443_v4  ;;  %v447_v8 = vld [vmem:[#allocation2 + $0x20] sm:$0xff]   ;;  %v449_v10 = vld [vmem:[#allocation2 + $0x30] sm:$0xff]   ;;  %v450_v11 = vld [vmem:[#allocation2 + $0x38] sm:$0xff]  }
  0x29   :  { %416 = vmatprep.subr.bf16.mxu0 %v511_v0  ;;  %398 = vmatprep.subr.bf16.mxu1 %v511_v0  ;;  %v451_v12 = vld [vmem:[#allocation4] sm:$0xff]   ;;  %v452_v13 = vld [vmem:[#allocation4 + $0x8] sm:$0xff]   ;;  %v453_v14 = vld [vmem:[#allocation4 + $0x10] sm:$0xff]  }
  0x2a   :  { %v454_v15 = vld [vmem:[#allocation4 + $0x18] sm:$0xff]   ;;  %v455_v16 = vld [vmem:[#allocation4 + $0x20] sm:$0xff]   ;;  %v456_v17 = vld [vmem:[#allocation4 + $0x28] sm:$0xff]  }
  0x2b   :  { %393 = vmatmul.mubr.msk.bf16.vlgmr.msra.gmra.mrb[0].mxu0 %vm72_vm1, %v59_v3  ;;  %v349_v18 = vld [vmem:[%s617_s2] ss:$0 sm:$0xff]  ;;  %v457_v26 = vld [vmem:[#allocation4 + $0x30] sm:$0xff]   ;;  %v458_v27 = vld [vmem:[#allocation4 + $0x38] sm:$0xff]  }
  0x2c   :  { %432 = vmatprep.mubr.msk.bf16.mxu0 %vm512_vm0, %v511_v0  ;;  %399 = vmatpush3.bf16.msra.mxu1 %v444_v5  ;;  %v352_v28 = vld [vmem:[%s619_s4] ss:$0 sm:$0xff] }
  0x2d   :  { %400 = vmatprep.subr.bf16.mxu1 %v511_v0  ;;  %417 = vmatpush3.bf16.msra.mxu0 %v451_v12  ;;  %v361_v36 = vld [vmem:[%s621_s6] ss:$0 sm:$0xff] }
  0x2e   :  { %418 = vmatprep.subr.bf16.mxu0 %v511_v0 }
  0x30   :  { %401 = vmatpush3.bf16.msra.mxu1 %v445_v6 }
  0x31   :  { %402 = vmatprep.subr.bf16.mxu1 %v511_v0  ;;  %419 = vmatpush3.bf16.msra.mxu0 %v452_v13 }
  0x32   :  { %420 = vmatprep.subr.bf16.mxu0 %v511_v0 }
  0x34   :  { %403 = vmatpush3.bf16.msra.mxu1 %v446_v7 }
  0x35   :  { %404 = vmatprep.subr.bf16.mxu1 %v511_v0  ;;  %421 = vmatpush3.bf16.msra.mxu0 %v453_v14 }
  0x36   :  { %422 = vmatprep.subr.bf16.mxu0 %v511_v0 }
  0x38   :  { %405 = vmatpush3.bf16.msra.mxu1 %v447_v8 }
  0x39   :  { %406 = vmatprep.subr.bf16.mxu1 %v511_v0  ;;  %423 = vmatpush3.bf16.msra.mxu0 %v454_v15 }
  0x3a   :  { %424 = vmatprep.subr.bf16.mxu0 %v511_v0 }
  0x3c   :  { %407 = vmatpush3.bf16.msra.mxu1 %v448_v9 }
  0x3d   :  { %408 = vmatprep.subr.bf16.mxu1 %v511_v0  ;;  %425 = vmatpush3.bf16.msra.mxu0 %v455_v16 }
  0x3e   :  { %426 = vmatprep.subr.bf16.mxu0 %v511_v0 }
  0x40   :  { %409 = vmatpush3.bf16.msra.mxu1 %v449_v10 }
  0x41   :  { %410 = vmatprep.subr.bf16.mxu1 %v511_v0  ;;  %427 = vmatpush3.bf16.msra.mxu0 %v456_v17 }
  0x42   :  { %428 = vmatprep.subr.bf16.mxu0 %v511_v0 }
  0x44   :  { %411 = vmatpush3.bf16.msra.mxu1 %v450_v11 }
  0x45   :  { %429 = vmatpush3.bf16.msra.mxu0 %v457_v26 }
  0x46   :  { %430 = vmatprep.subr.bf16.mxu0 %v511_v0 }
  0x49   :  { %431 = vmatpush3.bf16.msra.mxu0 %v458_v27 }
  0xfe   :  { %v110_v19 = vpop.f32.mrb[0].mxu0 }
  0xff   :  { %v111_v20 = vadd.f32 %v349_v18, %v110_v19  ;;  %v394_v21 = vpop.f32.mrb[1].mxu0 }
 0x100   :  { %v113_v22 = vpop.f32.mrb[2].mxu0 }
 0x101   :  { %v116_v23 = vmax.f32 %v111_v20, 0.0  ;;  %v395_v24 = vpop.f32.mrb[3].mxu0 }
 0x103   :  { %v134_v25 = vpack.c.bf16 %v116_v23, %v116_v23 }
 0x105   :  { %413 = vmatmul.mubr.bf16.vlgmr.msra.gmra.mrb[0].mxu1 %v134_v25 }
 0x1d8   :  { %v223_v29 = vpop.f32.mrb[0].mxu1 }
 0x1d9   :  { %v224_v30 = vadd.f32 %v352_v28, %v223_v29  ;;  %v414_v31 = vpop.f32.mrb[1].mxu1 }
 0x1da   :  { %v226_v32 = vpop.f32.mrb[2].mxu1 }
 0x1db   :  { %v229_v33 = vmax.f32 %v224_v30, 0.0  ;;  %v415_v34 = vpop.f32.mrb[3].mxu1 }
 0x1dd   :  { %v247_v35 = vpack.c.bf16 %v229_v33, %v229_v33 }
 0x1df   :  { %433 = vmatmul.mubr.bf16.vlgmr.msra.gmra.mrb[4].mxu0 %v247_v35 }
 0x2b2   :  { %v336_v37 = vpop.f32.mrb[4].mxu0 }
 0x2b3   :  { %v337_v38 = vadd.f32 %v361_v36, %v336_v37  ;;  %v434_v39 = vpop.f32.mrb[5].mxu0 }
 0x2b4   :  { %v339_v40 = vpop.f32.mrb[6].mxu0 }
 0x2b5   :  { %342 = vst [vmem:[%s622_s7] sm:$0xff] %v337_v38  ;;  %v435_v41 = vpop.f32.mrb[7].mxu0 }
 0x2b6   :  { %347 = vsyncpa [#allocation3], 1 }
 0x2b7   :  { %348 = vsyncpa [#allocation5], 1 }

</bundles_post_ra>
